<compile_context>
chip_gen: v7x
topology: tpu7x:2x2x1
jax: 0.10.0
libtpu: 0.0.40
codegen_flags: <defaults>
</compile_context>

<pallas_src>
import functools

import jax
import jax.numpy as jnp
from jax.experimental import pallas as pl
from jax.experimental.pallas import tpu as pltpu

_NEG_PAD = -1e30  # exactly representable-ish in f32/bf16; exp() underflows to 0


def _round_up(x: int, m: int) -> int:
    return ((x + m - 1) // m) * m


def _default_num_splits() -> int:
    """2 batch shards on 2-TC chips (v7x), 1 on single-TC chips (v5e/v6e)."""
    try:
        kind = jax.devices()[0].device_kind.lower()
    except Exception:  # pragma: no cover - defensive only
        return 1
    return 2 if ("v7" in kind or "7x" in kind) else 1


def _distill_kl_kernel(ys_ref, yt_ref, out_ref, acc_ref, *, inv_t):
    """One (tb, C_pad) tile of student/teacher logits.

    Grid is (num_splits, tiles_per_split):
      axis 0 ("parallel")  : independent batch shards (one per TC on v7x)
      axis 1 ("arbitrary") : reduction over the shard's batch tiles

    acc_ref is an (8, C_pad) f32 vreg-aligned accumulator; the sublane +
    cross-lane collapse happens only in the epilogue, the T^2/N scaling in
    the wrapper.  Padded lanes / rows already carry -1e30 logits (wrapper),
    so no masking is needed here.
    """
    i = pl.program_id(1)

    @pl.when(i == 0)
    def _():
        acc_ref[...] = jnp.zeros_like(acc_ref)

    tb, c_pad = ys_ref.shape
    ys = ys_ref[...].astype(jnp.float32) * inv_t
    yt = yt_ref[...].astype(jnp.float32) * inv_t

    # Student: stable shift + log-sum-exp (log-softmax never materialized).
    ys_shift = ys - jnp.max(ys, axis=-1, keepdims=True)
    log_zs = jnp.log(jnp.sum(jnp.exp(ys_shift), axis=-1, keepdims=True))

    # Teacher: single exp(); softmax via reciprocal; log-sum-exp reused.
    yt_shift = yt - jnp.max(yt, axis=-1, keepdims=True)
    exp_yt = jnp.exp(yt_shift)
    zt = jnp.sum(exp_yt, axis=-1, keepdims=True)
    inv_zt = pl.reciprocal(zt)          # exact reciprocal on (tb, 1)
    log_zt = jnp.log(zt)

    # Fused:  p_t * (log p_t - log p_s)
    #       = exp_yt * inv_zt * ((yt_shift - ys_shift) - (log_zt - log_zs))
    # On padded lanes exp_yt == 0 exactly and diff stays finite -> contrib 0.
    diff = (yt_shift - ys_shift) - (log_zt - log_zs)
    prod = (exp_yt * inv_zt) * diff

    # vreg-aligned accumulate: collapse the batch axis only down to 8
    # sublanes (pure VALU adds of full vreg slabs, no XLU sublane reduce).
    acc_ref[...] += prod.reshape(tb // 8, 8, c_pad).sum(axis=0)

    @pl.when(i == pl.num_programs(1) - 1)
    def _():
        total = jnp.sum(acc_ref[...])
        lane = jax.lax.broadcasted_iota(jnp.int32, out_ref.shape, 1)
        out_ref[...] = jnp.where(lane == 0, total, jnp.float32(0.0))


def distill_kl(y_s, y_t, T, *, tile_batch=512, num_splits=None,
               vmem_limit_bytes=32 * 1024 * 1024):
    """Pallas implementation of DistillKL.forward. y_s, y_t: (N, C) logits."""
    assert y_s.shape == y_t.shape and y_s.ndim == 2
    N, C = y_s.shape

    if num_splits is None:
        num_splits = _default_num_splits()

    c_pad = _round_up(C, 128)

    # Pick a batch tile: big (amortizes ~0.35us per grid step) but bounded by
    # a VMEM budget that covers the two double-buffered input streams PLUS
    # the live f32 full-tile intermediates (~5 tiles), and by rows per split.
    bytes_per_row = c_pad * (
        2 * (y_s.dtype.itemsize + y_t.dtype.itemsize)   # 2 inputs x 2 buffers
        + 5 * 4                                         # f32 temporaries
    )
    budget = int(0.6 * vmem_limit_bytes)
    max_tb = max(8, (budget // bytes_per_row) // 8 * 8)
    rows_per_split = _round_up(max(1, -(-N // num_splits)), 8)
    tb = min(_round_up(tile_batch, 8), max_tb, rows_per_split)
    tiles_per_split = -(-rows_per_split // tb)
    n_pad = num_splits * tiles_per_split * tb

    if n_pad != N or c_pad != C:
        pad = ((0, n_pad - N), (0, c_pad - C))
        # Pad with a large negative logit:
        #  * padded class lanes: exp underflows to exactly 0 -> 0 contrib;
        #  * padded rows: identical uniform softmaxes for both tensors -> 0.
        # (HBM-side pad, so the hot loop needs no mask.)
        y_s = jnp.pad(y_s, pad, constant_values=_NEG_PAD)
        y_t = jnp.pad(y_t, pad, constant_values=_NEG_PAD)

    kernel = functools.partial(_distill_kl_kernel, inv_t=float(1.0 / T))

    in_map = lambda c, i: (c * tiles_per_split + i, 0)
    n_elems = n_pad * c_pad
    cost = pl.CostEstimate(
        flops=8 * n_elems,
        transcendentals=2 * n_elems + 2 * n_pad,
        bytes_accessed=n_elems * (y_s.dtype.itemsize + y_t.dtype.itemsize)
        + 4 * 128 * num_splits,
    )

    partials = pl.pallas_call(
        kernel,
        out_shape=jax.ShapeDtypeStruct((1, 128 * num_splits), jnp.float32),
        grid=(num_splits, tiles_per_split),
        in_specs=[
            pl.BlockSpec((tb, c_pad), in_map),
            pl.BlockSpec((tb, c_pad), in_map),
        ],
        out_specs=pl.BlockSpec((1, 128), lambda c, i: (0, c)),
        scratch_shapes=[pltpu.VMEM((8, c_pad), jnp.float32)],
        compiler_params=pltpu.CompilerParams(
            dimension_semantics=("parallel", "arbitrary"),
            vmem_limit_bytes=vmem_limit_bytes,
        ),
        cost_estimate=cost,
    )(y_s, y_t)

    # Sum the per-split partials; apply batchmean + T**2 exactly once.
    return jnp.sum(partials) * jnp.float32(T * T / N)


def distill_kl_ref(y_s, y_t, T):
    """Pure-JAX reference matching the PyTorch module."""
    log_p_s = jax.nn.log_softmax(y_s / T, axis=1)
    p_t = jax.nn.softmax(y_t / T, axis=1)
    log_p_t = jax.nn.log_softmax(y_t / T, axis=1)
    kl = jnp.sum(p_t * (log_p_t - log_p_s)) / y_s.shape[0]
    return kl * (T ** 2)


if __name__ == "__main__":
    key = jax.random.PRNGKey(0)
    k1, k2 = jax.random.split(key)

    N, C = 16, 32          # small synthetic logits: batch=16, classes=32
    T = 4.0                # distillation temperature

    y_s = jax.random.normal(k1, (N, C), dtype=jnp.float32)
    y_t = jax.random.normal(k2, (N, C), dtype=jnp.float32)

    loss = distill_kl(y_s, y_t, T)
    loss = jax.block_until_ready(loss)

    ref = distill_kl_ref(y_s, y_t, T)
    assert jnp.allclose(loss, ref, rtol=1e-4, atol=1e-5), (loss, ref)

    print("KERNEL_OK")
</pallas_src>

<mosaic_0001>
module attributes {stable_mosaic.version = 11 : i64} {
  func.func @_distill_kl_kernel(%arg0: i32, %arg1: i32, %arg2: memref<16x128xf32, #tpu.memory_space<vmem>>, %arg3: memref<16x128xf32, #tpu.memory_space<vmem>>, %arg4: memref<1x128xf32, #tpu.memory_space<vmem>>, %arg5: memref<8x128xf32, #tpu.memory_space<vmem>>) attributes {dimension_semantics = [#tpu.dimension_semantics<parallel>, #tpu.dimension_semantics<arbitrary>], iteration_bounds = array<i64: 1, 1>, scalar_prefetch = 0 : i64, scratch_operands = 1 : i64, tpu.core_type = #tpu.core_type<tc>, window_params = [{transform_indices = @transform_0, window_bounds = array<i64: 16, 128>}, {transform_indices = @transform_1, window_bounds = array<i64: 16, 128>}, {transform_indices = @transform_2, window_bounds = array<i64: 1, 128>}]} {
    %c0_i32 = arith.constant 0 : i32
    %0 = arith.cmpi eq, %arg1, %c0_i32 : i32
    %1 = arith.extui %0 : i1 to i32
    %c0_i32_0 = arith.constant 0 : i32
    %2 = arith.cmpi ne, %1, %c0_i32_0 : i32
    scf.if %2 {
      %cst_16 = arith.constant 0.000000e+00 : f32
      %41 = vector.broadcast %cst_16 : f32 to vector<8x128xf32>
      %c0_17 = arith.constant 0 : index
      %c0_18 = arith.constant 0 : index
      %42 = vector.load %arg5[%c0_17, %c0_18] : memref<8x128xf32, #tpu.memory_space<vmem>>, vector<8x128xf32>
      tpu.vector_store %arg5[%c0_17, %c0_18], %41 {strides = array<i32>} : memref<8x128xf32, #tpu.memory_space<vmem>>, vector<8x128xf32>,
    } else {
    }
    %c0 = arith.constant 0 : index
    %c0_1 = arith.constant 0 : index
    %3 = vector.load %arg2[%c0, %c0_1] : memref<16x128xf32, #tpu.memory_space<vmem>>, vector<16x128xf32>
    %cst = arith.constant 2.500000e-01 : f32
    %4 = vector.broadcast %cst : f32 to vector<16x128xf32>
    %5 = arith.mulf %3, %4 : vector<16x128xf32>
    %c0_2 = arith.constant 0 : index
    %c0_3 = arith.constant 0 : index
    %6 = vector.load %arg3[%c0_2, %c0_3] : memref<16x128xf32, #tpu.memory_space<vmem>>, vector<16x128xf32>
    %cst_4 = arith.constant 2.500000e-01 : f32
    %7 = vector.broadcast %cst_4 : f32 to vector<16x128xf32>
    %8 = arith.mulf %6, %7 : vector<16x128xf32>
    %cst_5 = arith.constant dense<0xFF800000> : vector<16xf32>
    %9 = vector.multi_reduction <maximumf>, %5, %cst_5 [1] : vector<16x128xf32> to vector<16xf32>
    %10 = vector.shape_cast %9 : vector<16xf32> to vector<16x1xf32>
    %11 = vector.broadcast %10 : vector<16x1xf32> to vector<16x128xf32>
    %12 = arith.subf %5, %11 : vector<16x128xf32>
    %13 = math.exp %12 : vector<16x128xf32>
    %cst_6 = arith.constant dense<0.000000e+00> : vector<16xf32>
    %14 = vector.multi_reduction <add>, %13, %cst_6 [1] : vector<16x128xf32> to vector<16xf32>
    %15 = vector.shape_cast %14 : vector<16xf32> to vector<16x1xf32>
    %16 = math.log %15 : vector<16x1xf32>
    %cst_7 = arith.constant dense<0xFF800000> : vector<16xf32>
    %17 = vector.multi_reduction <maximumf>, %8, %cst_7 [1] : vector<16x128xf32> to vector<16xf32>
    %18 = vector.shape_cast %17 : vector<16xf32> to vector<16x1xf32>
    %19 = vector.broadcast %18 : vector<16x1xf32> to vector<16x128xf32>
    %20 = arith.subf %8, %19 : vector<16x128xf32>
    %21 = math.exp %20 : vector<16x128xf32>
    %cst_8 = arith.constant dense<0.000000e+00> : vector<16xf32>
    %22 = vector.multi_reduction <add>, %21, %cst_8 [1] : vector<16x128xf32> to vector<16xf32>
    %23 = vector.shape_cast %22 : vector<16xf32> to vector<16x1xf32>
    %24 = tpu.reciprocal %23 : vector<16x1xf32> -> vector<16x1xf32>
    %25 = math.log %23 : vector<16x1xf32>
    %26 = arith.subf %20, %12 : vector<16x128xf32>
    %27 = arith.subf %25, %16 : vector<16x1xf32>
    %28 = vector.broadcast %27 : vector<16x1xf32> to vector<16x128xf32>
    %29 = arith.subf %26, %28 : vector<16x128xf32>
    %30 = vector.broadcast %24 : vector<16x1xf32> to vector<16x128xf32>
    %31 = arith.mulf %21, %30 : vector<16x128xf32>
    %32 = arith.mulf %31, %29 : vector<16x128xf32>
    %c0_9 = arith.constant 0 : index
    %c0_10 = arith.constant 0 : index
    %33 = vector.load %arg5[%c0_9, %c0_10] : memref<8x128xf32, #tpu.memory_space<vmem>>, vector<8x128xf32>
    %34 = vector.shape_cast %32 : vector<16x128xf32> to vector<2x8x128xf32>
    %cst_11 = arith.constant dense<0.000000e+00> : vector<8x128xf32>
    %35 = vector.multi_reduction <add>, %34, %cst_11 [0] : vector<2x8x128xf32> to vector<8x128xf32>
    %36 = arith.addf %33, %35 : vector<8x128xf32>
    %c0_12 = arith.constant 0 : index
    %c0_13 = arith.constant 0 : index
    %37 = vector.load %arg5[%c0_12, %c0_13] : memref<8x128xf32, #tpu.memory_space<vmem>>, vector<8x128xf32>
    tpu.vector_store %arg5[%c0_12, %c0_13], %36 {strides = array<i32>} : memref<8x128xf32, #tpu.memory_space<vmem>>, vector<8x128xf32>,
    %c0_i32_14 = arith.constant 0 : i32
    %38 = arith.cmpi eq, %arg1, %c0_i32_14 : i32
    %39 = arith.extui %38 : i1 to i32
    %c0_i32_15 = arith.constant 0 : i32
    %40 = arith.cmpi ne, %39, %c0_i32_15 : i32
    scf.if %40 {
      %c0_16 = arith.constant 0 : index
      %c0_17 = arith.constant 0 : index
      %41 = vector.load %arg5[%c0_16, %c0_17] : memref<8x128xf32, #tpu.memory_space<vmem>>, vector<8x128xf32>
      %42 = vector.shape_cast %41 : vector<8x128xf32> to vector<1x8x128xf32>
      %cst_18 = arith.constant dense<0.000000e+00> : vector<1xf32>
      %43 = vector.multi_reduction <add>, %42, %cst_18 [1, 2] : vector<1x8x128xf32> to vector<1xf32>
      %44 = vector.shape_cast %43 : vector<1xf32> to vector<1x1x1xf32>
      %45 = vector.extract %44[0, 0, 0] : f32 from vector<1x1x1xf32>
      %46 = tpu.iota {dimensions = array<i32: 1>} : vector<1x128xi32>
      %c0_i32_19 = arith.constant 0 : i32
      %47 = vector.broadcast %c0_i32_19 : i32 to vector<1x128xi32>
      %48 = arith.cmpi eq, %46, %47 : vector<1x128xi32>
      %cst_20 = arith.constant 0.000000e+00 : f32
      %49 = vector.broadcast %45 : f32 to vector<1x128xf32>
      %50 = vector.broadcast %cst_20 : f32 to vector<1x128xf32>
      %51 = arith.select %48, %49, %50 : vector<1x128xi1>, vector<1x128xf32>
      %c0_21 = arith.constant 0 : index
      %c0_22 = arith.constant 0 : index
      %52 = vector.load %arg4[%c0_21, %c0_22] : memref<1x128xf32, #tpu.memory_space<vmem>>, vector<1x128xf32>
      tpu.vector_store %arg4[%c0_21, %c0_22], %51 {strides = array<i32>} : memref<1x128xf32, #tpu.memory_space<vmem>>, vector<1x128xf32>,
    } else {
    }
    return
  }
  func.func @transform_0(%arg0: i32, %arg1: i32) -> (i32, i32) {
    %c1_i32 = arith.constant 1 : i32
    %0 = arith.muli %arg0, %c1_i32 : i32
    %1 = arith.addi %0, %arg1 : i32
    %c0_i32 = arith.constant 0 : i32
    %c0_i32_0 = arith.constant 0 : i32
    return %1, %c0_i32 : i32, i32
  }
  func.func @transform_1(%arg0: i32, %arg1: i32) -> (i32, i32) {
    %c1_i32 = arith.constant 1 : i32
    %0 = arith.muli %arg0, %c1_i32 : i32
    %1 = arith.addi %0, %arg1 : i32
    %c0_i32 = arith.constant 0 : i32
    %c0_i32_0 = arith.constant 0 : i32
    return %1, %c0_i32 : i32, i32
  }
  func.func @transform_2(%arg0: i32, %arg1: i32) -> (i32, i32) {
    %c0_i32 = arith.constant 0 : i32
    %c0_i32_0 = arith.constant 0 : i32
    return %c0_i32, %arg0 : i32, i32
  }
}

</mosaic_0001>

<bundles_post_ra>
// kernel: tpu_custom_call.1
= control target key start
LH: loop header
LB: loop body
LE: loop exit
PB: predicated region body
PF: predicated region fallthrough
CT: control target
= control target key end

     0   :  { %7 = vsyncpa [#allocation4], 0  ;;  %s307_s0 = inlined_call_operand.hbm [shape: f32[16,128], index: 0, kind: input, shape index: {}]   ;;  %s308_s1 = inlined_call_operand.hbm [shape: f32[16,128], index: 1, kind: input, shape index: {}]   ;;  %s309_s2 = inlined_call_operand.hbm [shape: f32[1,128], index: 2, kind: output, shape index: {}]  }
   0x1   :  { %8 = vsyncpa [#allocation7], 0 }
   0x2   :  { %9 = vsyncpa [#allocation5], 0  ;;  %s251_s9 = smov [#allocation3]   ;;  %s179_s13 = scalar_lea.hbm %s307_s0, 256 }
   0x3   :  { %s19_s10 = sshll.u32 %s251_s9, 4  ;;  %p180_p0 = scmp.ne.s32.totalorder %s307_s0, %s179_s13  ;;  %s20_s10 = int_to_ptr.vmem [resolvable:$true] %s19_s10 }
   0x4   :  { %p183_p1 = scmp.lt.u32.totalorder %s179_s13, %s307_s0 }
   0x6   :  { %p185_p2 = pnand %p183_p1, %p180_p0 }
   0x8   :  { %188 = shalt.err (!%p185_p2)
}
   0x9   :  { %s189_s18 = scalar_lea.vmem %s20_s10, 256  ;;  %p194_p4 = scmp.lt.s32.totalorder %s20_s10, %s20_s10 }
   0xa   :  { %p190_p3 = scmp.ne.s32.totalorder %s20_s10, %s189_s18  ;;  %p195_p5 = scmp.lt.s32.totalorder %s189_s18, %s189_s18 }
   0xc   :  { %p196_p6 = por %p195_p5, %p194_p4 }
   0xe   :  { %p197_p7 = pnand %p196_p6, %p190_p3 }
  0x10   :  { %200 = shalt.err (!%p197_p7)
}
  0x11   :  { %s252_s19 = smov 128   ;;  %s253_s20 = smov 8  }
  0x12   :  { %25 = dma.hbm_to_vmem [thread:$0]  %s307_s0, 256, %s20_s10, [#allocation4], %s252_s19, %s252_s19, %s253_s20  }
  0x13   :  { %s254_s23 = smov [#allocation6]   ;;  %s201_s27 = scalar_lea.hbm %s308_s1, 256 }
  0x14   :  { %s35_s24 = sshll.u32 %s254_s23, 4  ;;  %p202_p8 = scmp.ne.s32.totalorder %s308_s1, %s201_s27  ;;  %s36_s24 = int_to_ptr.vmem [resolvable:$true] %s35_s24 }
  0x15   :  { %p205_p9 = scmp.lt.u32.totalorder %s201_s27, %s308_s1 }
  0x17   :  { %p207_p10 = pnand %p205_p9, %p202_p8 }
  0x19   :  { %210 = shalt.err (!%p207_p10)
}
  0x1a   :  { %s211_s4 = scalar_lea.vmem %s36_s24, 256  ;;  %p216_p12 = scmp.lt.s32.totalorder %s36_s24, %s36_s24 }
  0x1b   :  { %p212_p11 = scmp.ne.s32.totalorder %s36_s24, %s211_s4  ;;  %p217_p13 = scmp.lt.s32.totalorder %s211_s4, %s211_s4 }
  0x1d   :  { %p218_p0 = por %p217_p13, %p216_p12 }
  0x1f   :  { %p219_p1 = pnand %p218_p0, %p212_p11 }
  0x21   :  { %222 = shalt.err (!%p219_p1)
}
  0x22   :  { %41 = dma.hbm_to_vmem [thread:$0]  %s308_s1, 256, %s36_s24, [#allocation7], %s252_s19, %s252_s19, %s253_s20  }
  0x23   :  { %245 = dma.done.wait [#allocation4], 256  }
  0x24   :  { %246 = vsyncadd [#allocation4], 4294967040 }
  0x25   :  { %247 = dma.done.wait [#allocation7], 256  }
  0x26   :  { %248 = vsyncadd [#allocation7], 4294967040  ;;  %v61_v0 = vld [vmem:[#allocation6] sm:$0xff]  ;;  %v57_v1 = vld [vmem:[#allocation3] sm:$0xff]  ;;  %v130_v56 = vlaneseq  ;;  %s255_s1 = smov [#allocation8]  }
  0x27   :  { %v62_v2 = vld [vmem:[#allocation6 + $0x8] sm:$0xff]  ;;  %v63_v3 = vmul.f32 0.25, %v61_v0  ;;  %v59_v4 = vmul.f32 0.25, %v57_v1  ;;  %v58_v5 = vld [vmem:[#allocation3 + $0x8] sm:$0xff]  ;;  %s142_s6 = sshll.u32 %s255_s1, 4  ;;  %s143_s6 = int_to_ptr.vmem [resolvable:$true] %s142_s6 }
  0x28   :  { %v64_v6 = vmul.f32 0.25, %v62_v2  ;;  %v60_v7 = vmul.f32 0.25, %v58_v5  ;;  %v131_v57 = vand.u32 127, %v130_v56  ;;  %s223_s8 = scalar_lea.vmem %s143_s6, 16  ;;  %s227_s9 = scalar_lea.vmem %s143_s6, 32 }
  0x29   :  { %83 = vmax.xlane.f32.xlu1 %v63_v3  ;;  %65 = vmax.xlane.f32.xlu0 %v59_v4  ;;  %p224_p2 = scmp.ne.s32.totalorder %s143_s6, %s223_s8  ;;  %p228_p3 = scmp.lt.s32.totalorder %s143_s6, %s143_s6 }
  0x2a   :  { %vm132_vm0 = vcmp.eq.s32.totalorder %v131_v57, 0  ;;  %p229_p4 = scmp.lt.s32.totalorder %s227_s9, %s223_s8 }
  0x2c   :  { %p230_p5 = por %p229_p4, %p228_p3 }
  0x2d   :  { %85 = vmax.xlane.f32.xlu1 %v64_v6  ;;  %67 = vmax.xlane.f32.xlu0 %v60_v7 }
  0x2e   :  { %p231_p6 = pnand %p230_p5, %p224_p2 }
  0xb6   :  { %v84_v8 = vpop.xlane.xlu1 %83  ;;  %v66_v9 = vpop.xlane.xlu0 %65 }
  0xb7   :  { %v87_v10 = vsub.f32 %v63_v3, %v84_v8  ;;  %v69_v11 = vsub.f32 %v59_v4, %v66_v9 }
  0xb9   :  { %v71_v12 = vmul.f32 1.442695, %v69_v11  ;;  %v103_v13 = vsub.f32 %v87_v10, %v69_v11  ;;  %v89_v14 = vmul.f32 1.442695, %v87_v10 }
  0xba   :  { %v86_v15 = vpop.xlane.xlu1 %85  ;;  %v68_v16 = vpop.xlane.xlu0 %67 }
  0xbb   :  { %v88_v17 = vsub.f32 %v64_v6, %v86_v15  ;;  %v70_v18 = vsub.f32 %v60_v7, %v68_v16  ;;  %159 = vpow2.f32 %v71_v12 }
  0xbc   :  { %161 = vpow2.f32 %v89_v14 }
  0xbd   :  { %v73_v19 = vmul.f32 1.442695, %v70_v18  ;;  %v104_v20 = vsub.f32 %v88_v17, %v70_v18  ;;  %v91_v21 = vmul.f32 1.442695, %v88_v17 }
  0xbf   :  { %163 = vpow2.f32 %v73_v19 }
  0xc0   :  { %165 = vpow2.f32 %v91_v21 }
  0xc5   :  { %v160_v22 = vpop.eup %159 }
  0xc6   :  { %75 = vadd.xlane.f32.xlu0 %v160_v22  ;;  %v162_v23 = vpop.eup %161 }
  0xc9   :  { %v164_v24 = vpop.eup %163 }
  0xca   :  { %93 = vadd.xlane.f32.xlu0 %v162_v23  ;;  %77 = vadd.xlane.f32.xlu1 %v164_v24  ;;  %v166_v25 = vpop.eup %165 }
  0xce   :  { %95 = vadd.xlane.f32.xlu1 %v166_v25 }
 0x153   :  { %v76_v26 = vpop.xlane.xlu0 %75 }
 0x154   :  { %167 = vlog2.f32 %v76_v26 }
 0x157   :  { %v78_v27 = vpop.xlane.xlu1 %77  ;;  %v94_v28 = vpop.xlane.xlu0 %93 }
 0x158   :  { %169 = vlog2.f32 %v94_v28 }
 0x159   :  { %171 = vlog2.f32 %v78_v27 }
 0x15b   :  { %v96_v29 = vpop.xlane.xlu1 %95 }
 0x15c   :  { %173 = vlog2.f32 %v96_v29 }
 0x15d   :  { %175 = vrcp.f32 %v94_v28 }
 0x15e   :  { %177 = vrcp.f32 %v96_v29  ;;  %v168_v30 = vpop.eup %167 }
 0x15f   :  { %v80_v33 = vmul.f32 0.6931472, %v168_v30 }
 0x162   :  { %v170_v31 = vpop.eup %169 }
 0x163   :  { %v172_v32 = vpop.eup %171  ;;  %v100_v34 = vmul.f32 0.6931472, %v170_v31 }
 0x164   :  { %v82_v38 = vmul.f32 0.6931472, %v172_v32 }
 0x165   :  { %v105_v36 = vsub.f32 %v100_v34, %v80_v33 }
 0x166   :  { %v174_v35 = vpop.eup %173 }
 0x167   :  { %v176_v37 = vpop.eup %175  ;;  %v102_v39 = vmul.f32 0.6931472, %v174_v35  ;;  %v107_v42 = vsub.f32 %v103_v13, %v105_v36 }
 0x168   :  { %v178_v40 = vpop.eup %177  ;;  %v109_v44 = vmul.f32 %v176_v37, %v162_v23 }
 0x169   :  { %v106_v41 = vsub.f32 %v102_v39, %v82_v38  ;;  %v110_v45 = vmul.f32 %v178_v40, %v166_v25 }
 0x16a   :  { %v111_v46 = vmul.f32 %v109_v44, %v107_v42 }
 0x16b   :  { %v108_v43 = vsub.f32 %v104_v20, %v106_v41 }
 0x16d   :  { %v112_v47 = vmul.f32 %v110_v45, %v108_v43 }
 0x16f   :  { %v114_v48 = vadd.f32 %v112_v47, %v111_v46 }
 0x171   :  { %121 = vadd.xlane.f32.xlu0 %v114_v48 }
 0x1fe   :  { %v122_v49 = vpop.xlane.xlu0 %121 }
 0x1ff   :  { %v123_v50 = vrot.slane %v122_v49, 4 }
 0x201   :  { %v124_v51 = vadd.f32 %v123_v50, %v122_v49 }
 0x203   :  { %v125_v52 = vrot.slane %v124_v51, 2 }
 0x205   :  { %v126_v53 = vadd.f32 %v125_v52, %v124_v51 }
 0x207   :  { %v127_v54 = vrot.slane %v126_v53, 1 }
 0x209   :  { %v128_v55 = vadd.f32 %v127_v54, %v126_v53 }
 0x20b   :  { %152 = vpush %v128_v55 }
 0x23c   :  { %s153_s7 = spop %152 }
 0x23d   :  { %v133_v58 = vstv %s153_s7 }
 0x23e   :  { %v134_v59 = vsel %vm132_vm0, %v133_v58, 0.0 }
 0x23f   :  { %135 = vst [vmem:[#allocation8] sm:$0x1] %v134_v59 }
 0x240   :  { %234 = shalt.err (!%p231_p6)
}
 0x241   :  { %s235_s12 = scalar_lea.hbm %s309_s2, 16 }
 0x242   :  { %p236_p7 = scmp.ne.s32.totalorder %s309_s2, %s235_s12  ;;  %p239_p8 = scmp.lt.u32.totalorder %s235_s12, %s309_s2 }
 0x244   :  { %p241_p9 = pnand %p239_p8, %p236_p7 }
 0x246   :  { %244 = shalt.err (!%p241_p9)
}
 0x247   :  { %145 = dma.vmem_to_hbm [thread:$0]  %s143_s6, 16, %s309_s2, [#allocation5]  }
 0x248   :  { %249 = dma.done.wait [#allocation5], 16  }
 0x249   :  { %250 = vsyncadd [#allocation5], 4294967280 }
 0x24a   :  { %149 = vsyncpa [#allocation4], 1 }
 0x24b   :  { %150 = vsyncpa [#allocation7], 1 }
 0x24c   :  { %151 = vsyncpa [#allocation5], 1 }

</bundles_post_ra>
